<compile_context>
chip_gen: v7x
topology: tpu7x:2x2x1
jax: 0.10.0
libtpu: 0.0.40
codegen_flags: <defaults>
</compile_context>

<pallas_src>
import functools
import math

import jax
import jax.numpy as jnp
from jax.experimental import pallas as pl
from jax.experimental.pallas import tpu as pltpu


_VMEM_LIMIT_BYTES = 32 * 1024 * 1024      # explicit scoped-VMEM limit (safe on all gens)
_STREAM_BUDGET_BYTES = 20 * 1024 * 1024   # per-step double-buffered working-set cap (v7x-safe)


# --------------------------------------------------------------------------- #
# Kernel 1: K-tiled node-feature projection + fused attention-vector scores
# --------------------------------------------------------------------------- #
def _proj_kernel(x_ref, W_ref, A2_ref, h_ref, sc_ref, acc_ref):
    k = pl.program_id(1)

    @pl.when(k == 0)
    def _init():
        acc_ref[...] = jnp.zeros_like(acc_ref)

    # h += x_tile @ W_tile  (bf16 operands, f32 MXU accumulation)
    acc_ref[...] += jnp.dot(x_ref[...], W_ref[...],
                            preferred_element_type=jnp.float32)

    @pl.when(k == pl.num_programs(1) - 1)
    def _finalize():
        hb = acc_ref[...].astype(jnp.bfloat16)
        h_ref[...] = hb
        # Fused attention-vector matmul: A2 is (F_pad, 128) with lane 0 = a_src,
        # lane 1 = a_dst, remaining lanes zero -> one lane-dense MXU op.  The
        # dst scores are recovered from lane 1 in the wrapper (O(N) data), so
        # no per-tile transpose / extra skinny matmul is needed here.
        sc_ref[...] = jnp.dot(hb, A2_ref[...], preferred_element_type=jnp.float32)


# --------------------------------------------------------------------------- #
# Kernel 2: masked attention (online softmax over column tiles) + decoder
# --------------------------------------------------------------------------- #
def _attn_dec_kernel(hk_ref, sq_ref, sr_ref, adj_ref,
                     W1_ref, b1_ref, W2_ref, b2_ref,
                     out_ref, m_sc, l_sc, acc_sc, *, alpha, exp_bf16):
    j = pl.program_id(1)

    @pl.when(j == 0)
    def _init():
        m_sc[...] = jnp.full(m_sc.shape, -jnp.inf, dtype=jnp.float32)
        l_sc[...] = jnp.zeros(l_sc.shape, dtype=jnp.float32)
        acc_sc[...] = jnp.zeros(acc_sc.shape, dtype=jnp.float32)

    # e[i, k] = LeakyReLU(h[i].a_src + h[k].a_dst)   (implicit-concat form)
    e = sq_ref[:, 0:1] + sr_ref[...]                  # (TM,1)+(1,TN) -> (TM,TN)
    e = jnp.where(e > 0, e, alpha * e)                # LeakyReLU
    # Adjacency mask on native int8 (no f32 cast of the O(N^2) operand).
    e = jnp.where(adj_ref[...] > 0, e, -1.0e12)

    # Online softmax over column tiles; normalization deferred to the finalize.
    m_prev = m_sc[...]
    m_new = jnp.maximum(m_prev, jnp.max(e, axis=1, keepdims=True))
    corr = jnp.exp(m_prev - m_new)
    if exp_bf16:
        # v6e/v7x: bf16 EUP path roughly doubles exp throughput on the O(N^2) tile.
        p_b = jnp.exp((e - m_new).astype(jnp.bfloat16))
        p_f = p_b.astype(jnp.float32)
    else:
        # v5e and older (no bf16 EUP/VPU): keep f32 exp.
        p_f = jnp.exp(e - m_new)
        p_b = p_f.astype(jnp.bfloat16)
    l_sc[...] = corr * l_sc[...] + jnp.sum(p_f, axis=1, keepdims=True)
    acc_sc[...] = corr * acc_sc[...] + jnp.dot(
        p_b, hk_ref[...], preferred_element_type=jnp.float32)
    m_sc[...] = m_new

    @pl.when(j == pl.num_programs(1) - 1)
    def _finalize():
        # Deferred softmax normalization: one O(N*F) multiply, reciprocal on EUP.
        hp = acc_sc[...] * pl.reciprocal(l_sc[...], approx=True)
        enc = jnp.where(hp > 0, hp, jnp.expm1(jnp.minimum(hp, 0.0)))   # ELU
        # Decoder: bf16 MXU operands, f32 accumulation; biases stay f32.
        z1 = jnp.maximum(
            jnp.dot(enc.astype(jnp.bfloat16), W1_ref[...],
                    preferred_element_type=jnp.float32) + b1_ref[...], 0.0)
        z2 = jnp.dot(z1.astype(jnp.bfloat16), W2_ref[...],
                     preferred_element_type=jnp.float32) + b2_ref[...]
        out_ref[...] = jnp.maximum(z2, 0.0)


# --------------------------------------------------------------------------- #
# Wrapper
# --------------------------------------------------------------------------- #
def _round_up(x, m):
    return ((x + m - 1) // m) * m


def _pick_tile(n, cap):
    """Largest multiple of 128 that divides n (n is a 128-multiple) and is <= cap."""
    t = max(128, (min(cap, n) // 128) * 128)
    while t > 128 and n % t != 0:
        t -= 128
    return t


def _pad2(x, rows, cols, dtype):
    out = jnp.zeros((rows, cols), dtype)
    return out.at[:x.shape[0], :x.shape[1]].set(x.astype(dtype))


def _use_bf16_exp():
    try:
        kind = jax.devices()[0].device_kind.lower()
    except Exception:
        return False
    # bf16 EUP exists on v6e/v7x; keep f32 exp on v2-v5.
    return not any(s in kind for s in ("v2", "v3", "v4", "v5"))


def gat_2line_forward(inp, adj, params, alpha):
    """Full GAT_2line forward pass (two Pallas kernels)."""
    N, F = inp.shape
    W, a_src, a_dst, W1, b1, W2, b2 = params
    H = W1.shape[1]
    O = W2.shape[1]

    # Lane-dense padding of every feature / output dim, N padded to 128-multiple.
    F_pad = _round_up(max(F, 128), 128)
    H_pad = _round_up(max(H, 128), 128)
    O_pad = _round_up(max(O, 128), 128)
    N_pad = _round_up(max(N, 128), 128)

    # ---- kernel-1 tiles: large row tile TP, K-tiled contraction over F ------
    TP = _pick_tile(N_pad, 1024)
    TK = _pick_tile(F_pad, 512)

    # ---- kernel-2 tiles ------------------------------------------------------
    # Raised caps vs. the previous 256/512: fewer grid steps, fewer acc-rescale
    # passes, fewer h re-streams.  Keep >= 2 row tiles whenever N allows so the
    # "parallel" i axis can shard across v7x's two TensorCores, and bound the
    # double-buffered per-step footprint by a v7x-safe budget.
    tm_cap = 1024
    if N_pad >= 256:
        tm_cap = min(tm_cap, N_pad // 2)
    TM = _pick_tile(N_pad, tm_cap)
    TN = _pick_tile(N_pad, 2048)

    def _step_bytes(tm, tn):
        stream = (tm * tn * 1                 # adj tile (int8)
                  + tn * F_pad * 2            # h tile (bf16)
                  + tm * 128 * 4              # src-score tile (f32)
                  + tn * 4                    # dst-score row (f32)
                  + tm * O_pad * 4            # output tile (f32)
                  + F_pad * H_pad * 2 + H_pad * O_pad * 2   # decoder weights (bf16)
                  + H_pad * 4 + O_pad * 4)                  # biases (f32)
        scratch = tm * F_pad * 4 + 2 * tm * 4
        return 2 * stream + scratch           # inputs/outputs are double-buffered

    while _step_bytes(TM, TN) > _STREAM_BUDGET_BYTES and (TM > 128 or TN > 128):
        if TN >= TM and TN > 128:
            TN = _pick_tile(N_pad, TN - 128)
        elif TM > 128:
            TM = _pick_tile(N_pad, TM - 128)
        else:
            break

    # ---- operand packing / padding -------------------------------------------
    x_p = _pad2(inp, N_pad, F_pad, jnp.bfloat16)
    W_p = _pad2(W, F_pad, F_pad, jnp.bfloat16)

    A2_p = jnp.zeros((F_pad, 128), jnp.bfloat16)                 # fused [a_src|a_dst]
    A2_p = A2_p.at[:F, 0].set(a_src[:, 0].astype(jnp.bfloat16))
    A2_p = A2_p.at[:F, 1].set(a_dst[:, 0].astype(jnp.bfloat16))

    # Binarize BEFORE the int8 cast so fractional edge weights in (0,1) are not
    # truncated to 0 (which would wrongly mask those edges).
    adj_p = _pad2((adj > 0).astype(jnp.int8), N_pad, N_pad, jnp.int8)

    W1_p = _pad2(W1, F_pad, H_pad, jnp.bfloat16)
    b1_p = _pad2(b1, 1, H_pad, jnp.float32)
    W2_p = _pad2(W2, H_pad, O_pad, jnp.bfloat16)
    b2_p = _pad2(b2, 1, O_pad, jnp.float32)

    # ---- kernel 1: projection + attention scores ------------------------------
    h_p, sc_p = pl.pallas_call(
        _proj_kernel,
        out_shape=(jax.ShapeDtypeStruct((N_pad, F_pad), jnp.bfloat16),
                   jax.ShapeDtypeStruct((N_pad, 128), jnp.float32)),
        grid=(N_pad // TP, F_pad // TK),
        in_specs=[pl.BlockSpec((TP, TK), lambda i, k: (i, k)),
                  pl.BlockSpec((TK, F_pad), lambda i, k: (k, 0)),
                  pl.BlockSpec((F_pad, 128), lambda i, k: (0, 0))],
        out_specs=(pl.BlockSpec((TP, F_pad), lambda i, k: (i, 0)),
                   pl.BlockSpec((TP, 128), lambda i, k: (i, 0))),
        scratch_shapes=[pltpu.VMEM((TP, F_pad), jnp.float32)],
        compiler_params=pltpu.CompilerParams(
            dimension_semantics=("parallel", "arbitrary"),
            vmem_limit_bytes=_VMEM_LIMIT_BYTES),
    )(x_p, W_p, A2_p)

    # Destination scores as a lane-dense (1, N_pad) row, recovered from lane 1 of
    # the fused-score output: O(N) data, one tiny XLA transpose instead of a
    # per-tile dot_general (+ XLU transpose) inside kernel 1.
    sr_p = jnp.transpose(sc_p[:, 1:2])

    # ---- kernel 2: attention + decoder -----------------------------------------
    out_p = pl.pallas_call(
        functools.partial(_attn_dec_kernel, alpha=alpha, exp_bf16=_use_bf16_exp()),
        out_shape=jax.ShapeDtypeStruct((N_pad, O_pad), jnp.float32),
        grid=(N_pad // TM, N_pad // TN),
        in_specs=[
            pl.BlockSpec((TN, F_pad), lambda i, j: (j, 0)),   # h (value side)
            pl.BlockSpec((TM, 128), lambda i, j: (i, 0)),     # src scores (lane 0)
            pl.BlockSpec((1, TN), lambda i, j: (0, j)),       # dst scores (row)
            pl.BlockSpec((TM, TN), lambda i, j: (i, j)),      # adjacency (int8)
            pl.BlockSpec((F_pad, H_pad), lambda i, j: (0, 0)),
            pl.BlockSpec((1, H_pad), lambda i, j: (0, 0)),
            pl.BlockSpec((H_pad, O_pad), lambda i, j: (0, 0)),
            pl.BlockSpec((1, O_pad), lambda i, j: (0, 0)),
        ],
        out_specs=pl.BlockSpec((TM, O_pad), lambda i, j: (i, 0)),
        scratch_shapes=[pltpu.VMEM((TM, 1), jnp.float32),      # running max
                        pltpu.VMEM((TM, 1), jnp.float32),      # running sum
                        pltpu.VMEM((TM, F_pad), jnp.float32)], # running acc
        compiler_params=pltpu.CompilerParams(
            dimension_semantics=("parallel", "arbitrary"),
            vmem_limit_bytes=_VMEM_LIMIT_BYTES),
    )(h_p, sc_p, sr_p, adj_p, W1_p, b1_p, W2_p, b2_p)

    return out_p[:N, :O]


# --------------------------------------------------------------------------- #
# Parameter init + pure-JAX reference
# --------------------------------------------------------------------------- #
def _xavier_uniform(key, shape, gain):
    fan_in, fan_out = shape[0], shape[1]
    bound = gain * math.sqrt(6.0 / (fan_in + fan_out))
    return jax.random.uniform(key, shape, jnp.float32, -bound, bound)


def init_params(key, in_features, out_put):
    f4 = in_features // 4
    k = jax.random.split(key, 6)
    gain = 1.414
    W = _xavier_uniform(k[0], (in_features, in_features), gain)
    a = _xavier_uniform(k[1], (2 * in_features, 1), gain)      # (2F, 1)
    a_src = a[:in_features, :]                                 # (F, 1)
    a_dst = a[in_features:, :]                                 # (F, 1)
    b1_bound = 1.0 / math.sqrt(in_features)
    W1 = jax.random.uniform(k[2], (in_features, f4), jnp.float32, -b1_bound, b1_bound)
    b1 = jax.random.uniform(k[3], (1, f4), jnp.float32, -b1_bound, b1_bound)
    b2_bound = 1.0 / math.sqrt(f4)
    W2 = jax.random.uniform(k[4], (f4, out_put), jnp.float32, -b2_bound, b2_bound)
    b2 = jax.random.uniform(k[5], (1, out_put), jnp.float32, -b2_bound, b2_bound)
    return (W, a_src, a_dst, W1, b1, W2, b2)


def reference_forward(inp, adj, params, alpha):
    """Pure-JAX f32 reference of the PyTorch forward (dropout = identity)."""
    W, a_src, a_dst, W1, b1, W2, b2 = params
    h = inp @ W
    e = (h @ a_src) + (h @ a_dst).T
    e = jnp.where(e > 0, e, alpha * e)
    e = jnp.where(adj > 0, e, -1.0e12)
    att = jax.nn.softmax(e, axis=1)
    hp = att @ h
    enc = jnp.where(hp > 0, hp, jnp.expm1(jnp.minimum(hp, 0.0)))
    z1 = jnp.maximum(enc @ W1 + b1, 0.0)
    return jnp.maximum(z1 @ W2 + b2, 0.0)


if __name__ == "__main__":
    # Small shapes consistent with the module: N nodes, F input features.
    N, F, OUT = 16, 32, 8
    ALPHA = 0.2           # LeakyReLU slope
    DROP = 0.0            # dropout prob (identity in this inference kernel)

    key = jax.random.PRNGKey(0)
    k_inp, k_adj, k_par = jax.random.split(key, 3)

    inp = jax.random.normal(k_inp, (N, F), jnp.float32)
    adj = (jax.random.uniform(k_adj, (N, N)) > 0.5).astype(jnp.float32)
    adj = jnp.maximum(adj, jnp.eye(N, dtype=jnp.float32))   # self-loops

    params = init_params(k_par, F, OUT)

    out = gat_2line_forward(inp, adj, params, ALPHA)
    out = jax.block_until_ready(out)

    ref = reference_forward(inp, adj, params, ALPHA)
    assert out.shape == (N, OUT)
    # bf16 MXU operands (+ bf16 exp on v6e/v7x) -> loosened tolerance vs f32 ref.
    assert jnp.allclose(out, ref, atol=3e-2, rtol=3e-2), "mismatch vs reference"

    print("KERNEL_OK")
</pallas_src>

<mosaic_0001>
module attributes {stable_mosaic.version = 11 : i64} {
  func.func @_proj_kernel(%arg0: i32, %arg1: i32, %arg2: memref<128x128xbf16, #tpu.memory_space<vmem>>, %arg3: memref<128x128xbf16, #tpu.memory_space<vmem>>, %arg4: memref<128x128xbf16, #tpu.memory_space<vmem>>, %arg5: memref<128x128xbf16, #tpu.memory_space<vmem>>, %arg6: memref<128x128xf32, #tpu.memory_space<vmem>>, %arg7: memref<128x128xf32, #tpu.memory_space<vmem>>) attributes {dimension_semantics = [#tpu.dimension_semantics<parallel>, #tpu.dimension_semantics<arbitrary>], iteration_bounds = array<i64: 1, 1>, scalar_prefetch = 0 : i64, scratch_operands = 1 : i64, tpu.core_type = #tpu.core_type<tc>, window_params = [{transform_indices = @transform_0, window_bounds = array<i64: 128, 128>}, {transform_indices = @transform_1, window_bounds = array<i64: 128, 128>}, {pipeline_mode = #tpu.pipeline_mode<synchronous>, transform_indices = @transform_2, window_bounds = array<i64: 128, 128>}, {transform_indices = @transform_3, window_bounds = array<i64: 128, 128>}, {transform_indices = @transform_4, window_bounds = array<i64: 128, 128>}]} {
    %c0_i32 = arith.constant 0 : i32
    %0 = arith.cmpi eq, %arg1, %c0_i32 : i32
    %1 = arith.extui %0 : i1 to i32
    %c0_i32_0 = arith.constant 0 : i32
    %2 = arith.cmpi ne, %1, %c0_i32_0 : i32
    scf.if %2 {
      %cst_10 = arith.constant 0.000000e+00 : f32
      %12 = vector.broadcast %cst_10 : f32 to vector<128x128xf32>
      %c0_11 = arith.constant 0 : index
      %c0_12 = arith.constant 0 : index
      %13 = vector.load %arg7[%c0_11, %c0_12] : memref<128x128xf32, #tpu.memory_space<vmem>>, vector<128x128xf32>
      tpu.vector_store %arg7[%c0_11, %c0_12], %12 {strides = array<i32>} : memref<128x128xf32, #tpu.memory_space<vmem>>, vector<128x128xf32>,
    } else {
    }
    %c0 = arith.constant 0 : index
    %c0_1 = arith.constant 0 : index
    %3 = vector.load %arg7[%c0, %c0_1] : memref<128x128xf32, #tpu.memory_space<vmem>>, vector<128x128xf32>
    %c0_2 = arith.constant 0 : index
    %c0_3 = arith.constant 0 : index
    %4 = vector.load %arg2[%c0_2, %c0_3] : memref<128x128xbf16, #tpu.memory_space<vmem>>, vector<128x128xbf16>
    %c0_4 = arith.constant 0 : index
    %c0_5 = arith.constant 0 : index
    %5 = vector.load %arg3[%c0_4, %c0_5] : memref<128x128xbf16, #tpu.memory_space<vmem>>, vector<128x128xbf16>
    %cst = arith.constant dense<0.000000e+00> : vector<128x128xf32>
    %6 = tpu.matmul %4, %5, %cst {dimension_numbers = #tpu.dot_dimension_numbers<[1], [0], [0], [1], [0, 0, 1, 1], [], []>} : vector<128x128xbf16>, vector<128x128xbf16>, vector<128x128xf32> -> vector<128x128xf32>
    %7 = arith.addf %3, %6 : vector<128x128xf32>
    %c0_6 = arith.constant 0 : index
    %c0_7 = arith.constant 0 : index
    %8 = vector.load %arg7[%c0_6, %c0_7] : memref<128x128xf32, #tpu.memory_space<vmem>>, vector<128x128xf32>
    tpu.vector_store %arg7[%c0_6, %c0_7], %7 {strides = array<i32>} : memref<128x128xf32, #tpu.memory_space<vmem>>, vector<128x128xf32>,
    %c0_i32_8 = arith.constant 0 : i32
    %9 = arith.cmpi eq, %arg1, %c0_i32_8 : i32
    %10 = arith.extui %9 : i1 to i32
    %c0_i32_9 = arith.constant 0 : i32
    %11 = arith.cmpi ne, %10, %c0_i32_9 : i32
    scf.if %11 {
      %c0_10 = arith.constant 0 : index
      %c0_11 = arith.constant 0 : index
      %12 = vector.load %arg7[%c0_10, %c0_11] : memref<128x128xf32, #tpu.memory_space<vmem>>, vector<128x128xf32>
      %13 = arith.truncf %12 : vector<128x128xf32> to vector<128x128xbf16>
      %c0_12 = arith.constant 0 : index
      %c0_13 = arith.constant 0 : index
      %14 = vector.load %arg5[%c0_12, %c0_13] : memref<128x128xbf16, #tpu.memory_space<vmem>>, vector<128x128xbf16>
      tpu.vector_store %arg5[%c0_12, %c0_13], %13 {strides = array<i32>} : memref<128x128xbf16, #tpu.memory_space<vmem>>, vector<128x128xbf16>,
      %c0_14 = arith.constant 0 : index
      %c0_15 = arith.constant 0 : index
      %15 = vector.load %arg4[%c0_14, %c0_15] : memref<128x128xbf16, #tpu.memory_space<vmem>>, vector<128x128xbf16>
      %cst_16 = arith.constant dense<0.000000e+00> : vector<128x128xf32>
      %16 = tpu.matmul %13, %15, %cst_16 {dimension_numbers = #tpu.dot_dimension_numbers<[1], [0], [0], [1], [0, 0, 1, 1], [], []>} : vector<128x128xbf16>, vector<128x128xbf16>, vector<128x128xf32> -> vector<128x128xf32>
      %c0_17 = arith.constant 0 : index
      %c0_18 = arith.constant 0 : index
      %17 = vector.load %arg6[%c0_17, %c0_18] : memref<128x128xf32, #tpu.memory_space<vmem>>, vector<128x128xf32>
      tpu.vector_store %arg6[%c0_17, %c0_18], %16 {strides = array<i32>} : memref<128x128xf32, #tpu.memory_space<vmem>>, vector<128x128xf32>,
    } else {
    }
    return
  }
  func.func @transform_0(%arg0: i32, %arg1: i32) -> (i32, i32) {
    %c0_i32 = arith.constant 0 : i32
    return %arg0, %arg1 : i32, i32
  }
  func.func @transform_1(%arg0: i32, %arg1: i32) -> (i32, i32) {
    %c0_i32 = arith.constant 0 : i32
    %c0_i32_0 = arith.constant 0 : i32
    return %arg1, %c0_i32 : i32, i32
  }
  func.func @transform_2(%arg0: i32, %arg1: i32) -> (i32, i32) {
    %c0_i32 = arith.constant 0 : i32
    %c0_i32_0 = arith.constant 0 : i32
    %c0_i32_1 = arith.constant 0 : i32
    return %c0_i32, %c0_i32_0 : i32, i32
  }
  func.func @transform_3(%arg0: i32, %arg1: i32) -> (i32, i32) {
    %c0_i32 = arith.constant 0 : i32
    %c0_i32_0 = arith.constant 0 : i32
    return %arg0, %c0_i32 : i32, i32
  }
  func.func @transform_4(%arg0: i32, %arg1: i32) -> (i32, i32) {
    %c0_i32 = arith.constant 0 : i32
    %c0_i32_0 = arith.constant 0 : i32
    return %arg0, %c0_i32 : i32, i32
  }
}

</mosaic_0001>

<bundles_post_ra>
// kernel: tpu_custom_call.1
= control target key start
LH: loop header
LB: loop body
LE: loop exit
PB: predicated region body
PF: predicated region fallthrough
CT: control target
= control target key end

     0   :  { %10 = vsyncpa [#allocation4], 0  ;;  %s1126_s0 = inlined_call_operand.hbm [shape: bf16[128,128], index: 0, kind: input, shape index: {}]   ;;  %s1127_s1 = inlined_call_operand.hbm [shape: bf16[128,128], index: 1, kind: input, shape index: {}]   ;;  %s1128_s2 = inlined_call_operand.hbm [shape: bf16[128,128], index: 2, kind: input, shape index: {}]   ;;  %s1129_s3 = inlined_call_operand.hbm [shape: bf16[128,128], index: 3, kind: output, shape index: {0}]   ;;  %s1130_s4 = inlined_call_operand.hbm [shape: f32[128,128], index: 4, kind: output, shape index: {1}]  }
   0x1   :  { %11 = vsyncpa [#allocation7], 0 }
   0x2   :  { %12 = vsyncpa [#allocation5], 0 }
   0x3   :  { %13 = vsyncpa [#allocation11], 0  ;;  %s1013_s15 = smov [#allocation6]   ;;  %s1014_s17 = smov [#allocation3]  }
   0x4   :  { %s31_s16 = sshll.u32 %s1013_s15, 4  ;;  %s19_s18 = sshll.u32 %s1014_s17, 4  ;;  %s32_s16 = int_to_ptr.vmem [resolvable:$true] %s31_s16  ;;  %s1047_s18 = int_to_ptr.vmem [resolvable:$true] %s19_s18 }
   0x5   :  { %s895_s21 = scalar_lea.hbm %s1127_s1, 1024 }
   0x6   :  { %p896_p0 = scmp.ne.s32.totalorder %s1127_s1, %s895_s21  ;;  %p899_p1 = scmp.lt.u32.totalorder %s895_s21, %s1127_s1 }
   0x8   :  { %p901_p2 = pnand %p899_p1, %p896_p0 }
   0xa   :  { %904 = shalt.err (!%p901_p2)
}
   0xb   :  { %s905_s26 = scalar_lea.vmem %s32_s16, 1024  ;;  %p910_p4 = scmp.lt.s32.totalorder %s32_s16, %s32_s16 }
   0xc   :  { %p906_p3 = scmp.ne.s32.totalorder %s32_s16, %s905_s26  ;;  %p911_p5 = scmp.lt.s32.totalorder %s905_s26, %s905_s26 }
   0xe   :  { %p912_p6 = por %p911_p5, %p910_p4 }
  0x10   :  { %p913_p7 = pnand %p912_p6, %p906_p3 }
  0x12   :  { %916 = shalt.err (!%p913_p7)
}
  0x13   :  { %s1015_s27 = smov 64   ;;  %s1016_s28 = smov 4  }
  0x14   :  { %37 = dma.hbm_to_vmem [thread:$0]  %s1127_s1, 1024, %s32_s16, [#allocation7], %s1015_s27, %s1015_s27, %s1016_s28  }
  0x15   :  { %s917_s7 = scalar_lea.hbm %s1126_s0, 1024 }
  0x16   :  { %p918_p8 = scmp.ne.s32.totalorder %s1126_s0, %s917_s7  ;;  %p921_p9 = scmp.lt.u32.totalorder %s917_s7, %s1126_s0 }
  0x18   :  { %p923_p10 = pnand %p921_p9, %p918_p8 }
  0x1a   :  { %926 = shalt.err (!%p923_p10)
}
  0x1b   :  { %s927_s12 = scalar_lea.vmem %s1047_s18, 1024  ;;  %p932_p12 = scmp.lt.s32.totalorder %s1047_s18, %s1047_s18 }
  0x1c   :  { %p928_p11 = scmp.ne.s32.totalorder %s1047_s18, %s927_s12  ;;  %p933_p13 = scmp.lt.s32.totalorder %s927_s12, %s927_s12 }
  0x1e   :  { %p934_p0 = por %p933_p13, %p932_p12 }
  0x20   :  { %p935_p1 = pnand %p934_p0, %p928_p11 }
  0x22   :  { %938 = shalt.err (!%p935_p1)
}
  0x23   :  { %25 = dma.hbm_to_vmem [thread:$0]  %s1126_s0, 1024, %s1047_s18, [#allocation4], %s1015_s27, %s1015_s27, %s1016_s28  }
  0x24   :  { %s1017_s14 = smov [#allocation8]   ;;  %s939_s19 = scalar_lea.hbm %s1128_s2, 1024 }
  0x25   :  { %s43_s15 = sshll.u32 %s1017_s14, 4  ;;  %p940_p2 = scmp.ne.s32.totalorder %s1128_s2, %s939_s19  ;;  %s44_s15 = int_to_ptr.vmem [resolvable:$true] %s43_s15 }
  0x26   :  { %p943_p3 = scmp.lt.u32.totalorder %s939_s19, %s1128_s2 }
  0x28   :  { %p945_p4 = pnand %p943_p3, %p940_p2 }
  0x2a   :  { %948 = shalt.err (!%p945_p4)
}
  0x2b   :  { %s949_s24 = scalar_lea.vmem %s44_s15, 1024  ;;  %p954_p6 = scmp.lt.s32.totalorder %s44_s15, %s44_s15 }
  0x2c   :  { %p950_p5 = scmp.ne.s32.totalorder %s44_s15, %s949_s24  ;;  %p955_p7 = scmp.lt.s32.totalorder %s949_s24, %s949_s24 }
  0x2e   :  { %p956_p8 = por %p955_p7, %p954_p6 }
  0x30   :  { %p957_p9 = pnand %p956_p8, %p950_p5 }
  0x32   :  { %960 = shalt.err (!%p957_p9)
}
  0x33   :  { %49 = dma.hbm_to_vmem [thread:$0]  %s1128_s2, 1024, %s44_s15, [#allocation7], %s1015_s27, %s1015_s27, %s1016_s28  }
  0x34   :  { %1005 = dma.done.wait [#allocation4], 1024  }
  0x35   :  { %1006 = vsyncadd [#allocation4], 4294966272 }
  0x36   :  { %1007 = dma.done.wait [#allocation7], 2048  }
  0x37   :  { %1008 = vsyncadd [#allocation7], 4294965248  ;;  %v871_v0 = vld [vmem:[#allocation6] sm:$0xff]   ;;  %v872_v1 = vld [vmem:[#allocation6 + $0x8] sm:$0xff]   ;;  %s1018_s2 = smov [#allocation9]  }
  0x38   :  { %798 = vmatprep.subr.bf16.mxu0 %v871_v0  ;;  %v873_v2 = vld [vmem:[#allocation6 + $0x10] sm:$0xff]   ;;  %v874_v3 = vld [vmem:[#allocation6 + $0x18] sm:$0xff]   ;;  %v879_v4 = vld [vmem:[#allocation3] sm:$0xff]   ;;  %s634_s25 = sshll.u32 %s1018_s2, 4  ;;  %s635_s25 = int_to_ptr.vmem [resolvable:$true] %s634_s25 }
  0x39   :  { %799 = vmatpush3.bf16.msra.mxu0 %v871_v0  ;;  %814 = vmatprep.mubr.bf16.mxu0 %v879_v4  ;;  %v875_v5 = vld [vmem:[#allocation6 + $0x20] sm:$0xff]   ;;  %v876_v6 = vld [vmem:[#allocation6 + $0x28] sm:$0xff]   ;;  %v877_v9 = vld [vmem:[#allocation6 + $0x30] sm:$0xff]   ;;  %s961_s26 = scalar_lea.vmem %s635_s25, 1024  ;;  %p966_p11 = scmp.lt.s32.totalorder %s635_s25, %s635_s25 }
  0x3a   :  { %800 = vmatprep.subr.bf16.mxu0 %v872_v1  ;;  %v887_v7 = vld [vmem:[#allocation8] sm:$0xff]   ;;  %v888_v8 = vld [vmem:[#allocation8 + $0x8] sm:$0xff]   ;;  %v889_v10 = vld [vmem:[#allocation8 + $0x10] sm:$0xff]   ;;  %p962_p10 = scmp.ne.s32.totalorder %s635_s25, %s961_s26  ;;  %p967_p12 = scmp.lt.s32.totalorder %s961_s26, %s961_s26 }
  0x3b   :  { %830 = vmatprep.subr.bf16.mxu1 %v887_v7  ;;  %v878_v11 = vld [vmem:[#allocation6 + $0x38] sm:$0xff]   ;;  %v891_v13 = vld [vmem:[#allocation8 + $0x20] sm:$0xff]   ;;  %v880_v14 = vld [vmem:[#allocation3 + $0x8] sm:$0xff]  }
  0x3c   :  { %831 = vmatpush3.bf16.msra.mxu1 %v887_v7  ;;  %v890_v12 = vld [vmem:[#allocation8 + $0x18] sm:$0xff]   ;;  %v881_v15 = vld [vmem:[#allocation3 + $0x10] sm:$0xff]   ;;  %v892_v16 = vld [vmem:[#allocation8 + $0x28] sm:$0xff]   ;;  %p968_p13 = por %p967_p12, %p966_p11 }
  0x3d   :  { %801 = vmatpush3.bf16.msra.mxu0 %v872_v1  ;;  %832 = vmatprep.subr.bf16.mxu1 %v888_v8  ;;  %v893_v17 = vld [vmem:[#allocation8 + $0x30] sm:$0xff]   ;;  %v882_v18 = vld [vmem:[#allocation3 + $0x18] sm:$0xff]   ;;  %v883_v19 = vld [vmem:[#allocation3 + $0x20] sm:$0xff]  }
  0x3e   :  { %802 = vmatprep.subr.bf16.mxu0 %v873_v2  ;;  %v884_v20 = vld [vmem:[#allocation3 + $0x28] sm:$0xff]   ;;  %v885_v21 = vld [vmem:[#allocation3 + $0x30] sm:$0xff]   ;;  %v886_v22 = vld [vmem:[#allocation3 + $0x38] sm:$0xff]   ;;  %p969_p0 = pnand %p968_p13, %p962_p10 }
  0x3f   :  { %v894_v23 = vld [vmem:[#allocation8 + $0x38] sm:$0xff]  }
  0x40   :  { %833 = vmatpush3.bf16.msra.mxu1 %v888_v8 }
  0x41   :  { %803 = vmatpush3.bf16.msra.mxu0 %v873_v2  ;;  %834 = vmatprep.subr.bf16.mxu1 %v889_v10 }
  0x42   :  { %804 = vmatprep.subr.bf16.mxu0 %v874_v3 }
  0x44   :  { %835 = vmatpush3.bf16.msra.mxu1 %v889_v10 }
  0x45   :  { %805 = vmatpush3.bf16.msra.mxu0 %v874_v3  ;;  %836 = vmatprep.subr.bf16.mxu1 %v890_v12 }
  0x46   :  { %806 = vmatprep.subr.bf16.mxu0 %v875_v5 }
  0x48   :  { %837 = vmatpush3.bf16.msra.mxu1 %v890_v12 }
  0x49   :  { %807 = vmatpush3.bf16.msra.mxu0 %v875_v5  ;;  %838 = vmatprep.subr.bf16.mxu1 %v891_v13 }
  0x4a   :  { %808 = vmatprep.subr.bf16.mxu0 %v876_v6 }
  0x4c   :  { %839 = vmatpush3.bf16.msra.mxu1 %v891_v13 }
  0x4d   :  { %809 = vmatpush3.bf16.msra.mxu0 %v876_v6  ;;  %840 = vmatprep.subr.bf16.mxu1 %v892_v16 }
  0x4e   :  { %810 = vmatprep.subr.bf16.mxu0 %v877_v9 }
  0x50   :  { %841 = vmatpush3.bf16.msra.mxu1 %v892_v16 }
  0x51   :  { %811 = vmatpush3.bf16.msra.mxu0 %v877_v9  ;;  %842 = vmatprep.subr.bf16.mxu1 %v893_v17 }
  0x52   :  { %812 = vmatprep.subr.bf16.mxu0 %v878_v11 }
  0x54   :  { %843 = vmatpush3.bf16.msra.mxu1 %v893_v17 }
  0x55   :  { %813 = vmatpush3.bf16.msra.mxu0 %v878_v11  ;;  %844 = vmatprep.subr.bf16.mxu1 %v894_v23 }
  0x58   :  { %815 = vmatmul.mubr.bf16.vlgmr.msra.gmra.mrb[0].mxu0 %v880_v14  ;;  %845 = vmatpush3.bf16.msra.mxu1 %v894_v23 }
  0x59   :  { %818 = vmatprep.mubr.bf16.mxu0 %v881_v15 }
  0x60   :  { %819 = vmatmul.mubr.bf16.gmra.mrb[4].mxu0 %v882_v18 }
  0x61   :  { %822 = vmatprep.mubr.bf16.mxu0 %v883_v19 }
  0x68   :  { %823 = vmatmul.mubr.bf16.gmra.mrb[8].mxu0 %v884_v20 }
  0x69   :  { %826 = vmatprep.mubr.bf16.mxu0 %v885_v21 }
  0x70   :  { %827 = vmatmul.mubr.bf16.gmra.mrb[12].mxu0 %v886_v22 }
 0x12b   :  { %v816_v24 = vpop.f32.mrb[0].mxu0 }
 0x12c   :  { %v258_v25 = vpop.f32.mrb[1].mxu0 }
 0x12d   :  { %v817_v26 = vpop.f32.mrb[2].mxu0 }
 0x12e   :  { %v373_v27 = vpack.c.bf16 %v817_v26, %v816_v24  ;;  %v261_v28 = vpop.f32.mrb[3].mxu0 }
 0x12f   :  { %v372_v29 = vpack.c.bf16 %v261_v28, %v258_v25 }
 0x130   :  { %759 = vst [vmem:[#allocation9 + $0x8] sm:$0xff] %v373_v27  }
 0x131   :  { %723 = vst [vmem:[#allocation9] sm:$0xff] %v372_v29   ;;  %846 = vmatprep.mubr.bf16.mxu1 %v372_v29 }
 0x132   :  { %847 = vmatmul.mubr.bf16.vlgmr.msra.gmra.mrb[0].mxu1 %v373_v27 }
 0x133   :  { %v820_v30 = vpop.f32.mrb[4].mxu0 }
 0x134   :  { %v274_v31 = vpop.f32.mrb[5].mxu0 }
 0x135   :  { %v821_v32 = vpop.f32.mrb[6].mxu0 }
 0x136   :  { %v375_v33 = vpack.c.bf16 %v821_v32, %v820_v30  ;;  %v277_v34 = vpop.f32.mrb[7].mxu0 }
 0x137   :  { %v374_v35 = vpack.c.bf16 %v277_v34, %v274_v31 }
 0x138   :  { %761 = vst [vmem:[#allocation9 + $0x18] sm:$0xff] %v375_v33  }
 0x139   :  { %760 = vst [vmem:[#allocation9 + $0x10] sm:$0xff] %v374_v35   ;;  %850 = vmatprep.mubr.bf16.mxu1 %v374_v35 }
 0x13a   :  { %851 = vmatmul.mubr.bf16.gmra.mrb[4].mxu1 %v375_v33 }
 0x13b   :  { %v824_v36 = vpop.f32.mrb[8].mxu0 }
 0x13c   :  { %v290_v37 = vpop.f32.mrb[9].mxu0 }
 0x13d   :  { %v825_v38 = vpop.f32.mrb[10].mxu0 }
 0x13e   :  { %v377_v39 = vpack.c.bf16 %v825_v38, %v824_v36  ;;  %v293_v40 = vpop.f32.mrb[11].mxu0 }
 0x13f   :  { %v376_v41 = vpack.c.bf16 %v293_v40, %v290_v37 }
 0x140   :  { %763 = vst [vmem:[#allocation9 + $0x28] sm:$0xff] %v377_v39  }
 0x141   :  { %762 = vst [vmem:[#allocation9 + $0x20] sm:$0xff] %v376_v41   ;;  %854 = vmatprep.mubr.bf16.mxu1 %v376_v41 }
 0x142   :  { %855 = vmatmul.mubr.bf16.gmra.mrb[8].mxu1 %v377_v39 }
 0x143   :  { %v828_v42 = vpop.f32.mrb[12].mxu0 }
 0x144   :  { %v306_v43 = vpop.f32.mrb[13].mxu0 }
 0x145   :  { %v829_v44 = vpop.f32.mrb[14].mxu0 }
 0x146   :  { %v379_v45 = vpack.c.bf16 %v829_v44, %v828_v42  ;;  %v309_v46 = vpop.f32.mrb[15].mxu0 }
 0x147   :  { %v378_v47 = vpack.c.bf16 %v309_v46, %v306_v43 }
 0x148   :  { %765 = vst [vmem:[#allocation9 + $0x38] sm:$0xff] %v379_v45  }
 0x149   :  { %764 = vst [vmem:[#allocation9 + $0x30] sm:$0xff] %v378_v47   ;;  %858 = vmatprep.mubr.bf16.mxu1 %v378_v47 }
 0x14a   :  { %859 = vmatmul.mubr.bf16.gmra.mrb[12].mxu1 %v379_v45 }
 0x14b   :  { %972 = shalt.err (!%p969_p0)
}
 0x14c   :  { %s973_s5 = scalar_lea.hbm %s1129_s3, 1024 }
 0x14d   :  { %p974_p1 = scmp.ne.s32.totalorder %s1129_s3, %s973_s5  ;;  %p977_p2 = scmp.lt.u32.totalorder %s973_s5, %s1129_s3 }
 0x14f   :  { %p979_p3 = pnand %p977_p2, %p974_p1 }
 0x151   :  { %982 = shalt.err (!%p979_p3)
}
 0x152   :  { %640 = dma.vmem_to_hbm [thread:$0]  %s635_s25, 1024, %s1129_s3, [#allocation5], %s1015_s27, %s1015_s27, %s1016_s28  }
 0x153   :  { %s1019_s3 = smov [#allocation10]  }
 0x154   :  { %s646_s27 = sshll.u32 %s1019_s3, 4  ;;  %s647_s27 = int_to_ptr.vmem [resolvable:$true] %s646_s27 }
 0x155   :  { %s983_s28 = scalar_lea.vmem %s647_s27, 2048  ;;  %p988_p5 = scmp.lt.s32.totalorder %s647_s27, %s647_s27 }
 0x156   :  { %p984_p4 = scmp.ne.s32.totalorder %s647_s27, %s983_s28  ;;  %p989_p6 = scmp.lt.s32.totalorder %s983_s28, %s983_s28 }
 0x158   :  { %p990_p7 = por %p989_p6, %p988_p5 }
 0x15a   :  { %p991_p8 = pnand %p990_p7, %p984_p4 }
 0x205   :  { %v848_v48 = vpop.f32.mrb[0].mxu1 }
 0x206   :  { %615 = vst [vmem:[#allocation10 + $0x10] sm:$0xff] %v848_v48  ;;  %v550_v49 = vpop.f32.mrb[1].mxu1 }
 0x207   :  { %613 = vst [vmem:[#allocation10] sm:$0xff] %v550_v49  ;;  %v849_v50 = vpop.f32.mrb[2].mxu1 }
 0x208   :  { %616 = vst [vmem:[#allocation10 + $0x18] sm:$0xff] %v849_v50  ;;  %v553_v51 = vpop.f32.mrb[3].mxu1 }
 0x209   :  { %614 = vst [vmem:[#allocation10 + $0x8] sm:$0xff] %v553_v51 }
 0x20d   :  { %v852_v52 = vpop.f32.mrb[4].mxu1 }
 0x20e   :  { %619 = vst [vmem:[#allocation10 + $0x30] sm:$0xff] %v852_v52  ;;  %v566_v53 = vpop.f32.mrb[5].mxu1 }
 0x20f   :  { %617 = vst [vmem:[#allocation10 + $0x20] sm:$0xff] %v566_v53  ;;  %v853_v54 = vpop.f32.mrb[6].mxu1 }
 0x210   :  { %620 = vst [vmem:[#allocation10 + $0x38] sm:$0xff] %v853_v54  ;;  %v569_v55 = vpop.f32.mrb[7].mxu1 }
 0x211   :  { %618 = vst [vmem:[#allocation10 + $0x28] sm:$0xff] %v569_v55 }
 0x215   :  { %v856_v56 = vpop.f32.mrb[8].mxu1 }
 0x216   :  { %623 = vst [vmem:[#allocation10 + $0x50] sm:$0xff] %v856_v56  ;;  %v582_v57 = vpop.f32.mrb[9].mxu1 }
 0x217   :  { %621 = vst [vmem:[#allocation10 + $0x40] sm:$0xff] %v582_v57  ;;  %v857_v58 = vpop.f32.mrb[10].mxu1 }
 0x218   :  { %624 = vst [vmem:[#allocation10 + $0x58] sm:$0xff] %v857_v58  ;;  %v585_v59 = vpop.f32.mrb[11].mxu1 }
 0x219   :  { %622 = vst [vmem:[#allocation10 + $0x48] sm:$0xff] %v585_v59 }
 0x21d   :  { %v860_v60 = vpop.f32.mrb[12].mxu1 }
 0x21e   :  { %627 = vst [vmem:[#allocation10 + $0x70] sm:$0xff] %v860_v60  ;;  %v598_v61 = vpop.f32.mrb[13].mxu1 }
 0x21f   :  { %625 = vst [vmem:[#allocation10 + $0x60] sm:$0xff] %v598_v61  ;;  %v861_v62 = vpop.f32.mrb[14].mxu1 }
 0x220   :  { %628 = vst [vmem:[#allocation10 + $0x78] sm:$0xff] %v861_v62  ;;  %v601_v63 = vpop.f32.mrb[15].mxu1 }
 0x221   :  { %626 = vst [vmem:[#allocation10 + $0x68] sm:$0xff] %v601_v63 }
 0x222   :  { %994 = shalt.err (!%p991_p8)
}
 0x223   :  { %s995_s13 = scalar_lea.hbm %s1130_s4, 2048 }
 0x224   :  { %p996_p9 = scmp.ne.s32.totalorder %s1130_s4, %s995_s13  ;;  %p999_p10 = scmp.lt.u32.totalorder %s995_s13, %s1130_s4 }
 0x226   :  { %p1001_p11 = pnand %p999_p10, %p996_p9 }
 0x228   :  { %1004 = shalt.err (!%p1001_p11)
}
 0x229   :  { %s1020_s19 = smov 128   ;;  %s1021_s20 = smov 8  }
 0x22a   :  { %652 = dma.vmem_to_hbm [thread:$0]  %s647_s27, 2048, %s1130_s4, [#allocation11], %s1020_s19, %s1020_s19, %s1021_s20  }
 0x22b   :  { %1009 = dma.done.wait [#allocation5], 1024  }
 0x22c   :  { %1010 = vsyncadd [#allocation5], 4294966272 }
 0x22d   :  { %1011 = dma.done.wait [#allocation11], 2048  }
 0x22e   :  { %1012 = vsyncadd [#allocation11], 4294965248 }
 0x22f   :  { %659 = vsyncpa [#allocation4], 1 }
 0x230   :  { %660 = vsyncpa [#allocation7], 1 }
 0x231   :  { %661 = vsyncpa [#allocation5], 1 }
 0x232   :  { %662 = vsyncpa [#allocation11], 1 }

</bundles_post_ra>
